<compile_context>
chip_gen: v7x
topology: tpu7x:2x2x1
jax: 0.10.0
libtpu: 0.0.40
codegen_flags: <defaults>
</compile_context>

<pallas_src>
import jax
import jax.numpy as jnp
from jax import lax
from jax.experimental import pallas as pl
from jax.experimental.pallas import tpu as pltpu


def _round_down(x, m):
    return max(m, (x // m) * m)


def _device_tuning():
    """(row_tile_f32, num_splits) per TPU generation; safe fallback."""
    try:
        kind = jax.devices()[0].device_kind.lower()
    except Exception:
        kind = ""
    if "v7" in kind:
        return 4096, 2          # 2 MiB/input/step, shard reduction over 2 TensorCores
    if "v5 lite" in kind or "v5e" in kind or "v5lite" in kind:
        return 1024, 1          # v5e: tiling not the bottleneck; single TC
    return 2048, 1              # v6e and others: ~1 MiB/input/step, single TC


def _make_mod_mse_kernel(*, eps, valid_rows, C, tm, chunk, steps, n_blocks,
                         num_splits):
    eps = float(eps)
    n_chunks = tm // chunk
    # Static facts about the grid (Python bools -> dead branches never traced):
    maybe_partial = n_blocks * tm > valid_rows        # a partial last block exists
    has_redundant = num_splits * steps > n_blocks     # some grid cells map past it

    def kernel(pred_ref, true_ref, acc_ref):
        # grid = (num_splits [parallel], steps [arbitrary/reduction])
        c = pl.program_id(0)
        i = pl.program_id(1)

        @pl.when(i == 0)
        def _():
            acc_ref[...] = jnp.zeros_like(acc_ref)

        blk = c * steps + i          # logical block index
        row0 = blk * tm              # first global row covered by this block

        def accumulate(masked):
            def body(j, carry):
                a_acc, s_acc = carry
                r0 = pl.multiple_of(j * chunk, chunk)
                p = pred_ref[pl.ds(r0, chunk), :].astype(jnp.float32) + eps
                t = true_ref[pl.ds(r0, chunk), :].astype(jnp.float32)
                diff = p - t
                # |1 - t/p| == |(p - t)/p|  (reciprocal -> EUP slot)
                abs_t = jnp.abs(diff * pl.reciprocal(p, approx=False))
                sq_t = diff * diff
                if masked:
                    ri = lax.broadcasted_iota(jnp.int32, (chunk, C), 0)
                    valid = (row0 + r0 + ri) < valid_rows
                    abs_t = jnp.where(valid, abs_t, 0.0)
                    sq_t = jnp.where(valid, sq_t, 0.0)
                # Fold (chunk, C) -> (8, C) with sublane-aligned vreg adds.
                a_acc = a_acc + jnp.sum(abs_t.reshape(-1, 8, C), axis=0)
                s_acc = s_acc + jnp.sum(sq_t.reshape(-1, 8, C), axis=0)
                return a_acc, s_acc

            zero = jnp.zeros((8, C), jnp.float32)
            a_acc, s_acc = lax.fori_loop(0, n_chunks, body, (zero, zero))
            acc_ref[0] += a_acc
            acc_ref[1] += s_acc

        def dispatch():
            if maybe_partial:
                is_partial = (row0 + tm) > valid_rows
                @pl.when(is_partial)
                def _():
                    accumulate(masked=True)
                @pl.when(jnp.logical_not(is_partial))
                def _():
                    accumulate(masked=False)
            else:
                accumulate(masked=False)

        if has_redundant:
            # grid cells whose logical block lies past the data: skip entirely
            @pl.when(blk < n_blocks)
            def _():
                dispatch()
        else:
            dispatch()

    return kernel


def mod_mse(pred, true, l1=1, l2=1, eps=1e-05, *, row_tile=None, num_splits=None):
    """Pallas implementation of mod_mse. pred/true: any (matching) shape/dtype."""
    assert pred.shape == true.shape, (pred.shape, true.shape)
    n_total = int(pred.size)
    dtype = pred.dtype
    itemsize = jnp.dtype(dtype).itemsize
    lanes = 128
    sub = {4: 8, 2: 16, 1: 32}.get(itemsize, 8)   # sublane packing per dtype

    drt, dns = _device_tuning()
    if row_tile is None:
        # keep bytes-per-step roughly constant across dtypes
        row_tile = drt * max(1, 4 // max(itemsize, 1))
    if num_splits is None:
        num_splits = dns

    pred_flat = pred.reshape(-1)
    true_flat = true.reshape(-1)

    # Pick a free (bitcast) 2-D view. No padded HBM copy on the common paths.
    if n_total % lanes == 0:
        C = lanes
    else:
        C = pred.shape[-1] if pred.ndim >= 2 else n_total
        if C * itemsize * 8 > 6 * 2**20:
            # Rare corner: huge ragged minor dim. Pad flat array to the next
            # multiple of 128 (< 128 extra elems) with zero-contribution values.
            pad = (-n_total) % lanes
            pad_t = (jnp.float32(1.0) + jnp.float32(eps)).astype(dtype)
            pred_flat = jnp.concatenate([pred_flat, jnp.full((pad,), 1.0, dtype)])
            true_flat = jnp.concatenate([true_flat, jnp.full((pad,), pad_t, dtype)])
            C = lanes

    R = pred_flat.size // C
    pred2 = pred_flat.reshape(R, C)
    true2 = true_flat.reshape(R, C)
    valid_rows = R                      # rows that carry real data (mask threshold)

    if R < sub:
        # tiny input: pad rows up to one sublane-packed tile (negligible copy);
        # padded rows are masked out inside the kernel, values don't matter.
        pad_rows = sub - R
        pred2 = jnp.concatenate([pred2, jnp.zeros((pad_rows, C), dtype)], axis=0)
        true2 = jnp.concatenate([true2, jnp.zeros((pad_rows, C), dtype)], axis=0)
        R = sub

    # Row tile: big enough to amortize the ~0.35us/grid-step pipeline overhead,
    # capped so one (tm, C) block stays ~<= 2 MiB per input, rounded so the
    # in-kernel 64-row chunk loop divides it evenly.
    tm_cap = max(sub, (2 * 2**20) // max(C * itemsize, 1))
    tm = min(int(row_tile), R, tm_cap)
    tm = _round_down(tm, sub)
    if tm >= 64:
        tm = _round_down(tm, 64)
    chunk = 64 if tm % 64 == 0 else tm

    n_blocks = pl.cdiv(R, tm)
    num_splits = max(1, min(int(num_splits), n_blocks))
    steps = pl.cdiv(n_blocks, num_splits)

    kernel = _make_mod_mse_kernel(eps=eps, valid_rows=valid_rows, C=C, tm=tm,
                                  chunk=chunk, steps=steps, n_blocks=n_blocks,
                                  num_splits=num_splits)

    def in_map(c, i):
        # clamp so redundant trailing grid cells never index past the array
        return (jnp.minimum(c * steps + i, n_blocks - 1), 0)

    partials = pl.pallas_call(
        kernel,
        # per-split, per-term (8, C) partial sums
        out_shape=jax.ShapeDtypeStruct((num_splits * 2, 8, C), jnp.float32),
        grid_spec=pltpu.PrefetchScalarGridSpec(
            num_scalar_prefetch=0,
            grid=(num_splits, steps),
            in_specs=[
                pl.BlockSpec((tm, C), in_map),
                pl.BlockSpec((tm, C), in_map),
            ],
            # same output block across the reduction axis -> resident accumulator
            out_specs=pl.BlockSpec((2, 8, C), lambda c, i: (c, 0, 0)),
        ),
        compiler_params=pltpu.CompilerParams(
            # split across TensorCores on v7x; sequential reduction per split
            dimension_semantics=("parallel", "arbitrary"),
            vmem_limit_bytes=32 * 1024 * 1024,
        ),
    )(pred2, true2)

    # Epilogue: tiny cross-lane / cross-split reduce + weighting in plain XLA.
    partials = partials.reshape(num_splits, 2, 8, C)
    sum_abs = jnp.sum(partials[:, 0], dtype=jnp.float32)
    sum_sq = jnp.sum(partials[:, 1], dtype=jnp.float32)
    inv_n = jnp.float32(1.0 / n_total)
    return l1 * (sum_abs * inv_n) + l2 * (sum_sq * inv_n)


def mod_mse_ref(pred, true, l1=1, l2=1, eps=1e-05):
    p = pred.astype(jnp.float32) + eps
    t = true.astype(jnp.float32)
    return l1 * jnp.mean(jnp.abs(1.0 - t / p)) + l2 * jnp.mean((p - t) ** 2)


if __name__ == "__main__":
    key = jax.random.PRNGKey(0)
    k1, k2, k3, k4, k5, k6, k7, k8 = jax.random.split(key, 8)

    # 1) small batch of 16 samples with 128 regression outputs (128-aligned path)
    pred = jax.random.uniform(k1, (16, 128), jnp.float32, minval=0.1, maxval=2.0)
    true = jax.random.uniform(k2, (16, 128), jnp.float32, minval=0.1, maxval=2.0)
    loss = jax.block_until_ready(mod_mse(pred, true, l1=1, l2=1, eps=1e-05))
    ref = mod_mse_ref(pred, true, l1=1, l2=1, eps=1e-05)
    assert jnp.allclose(loss, ref, rtol=1e-5, atol=1e-6), (loss, ref)

    # 2) ragged shape (non-128 element count -> (rows, last_dim) view + row mask)
    pred_r = jax.random.uniform(k3, (7, 33), jnp.float32, minval=0.1, maxval=2.0)
    true_r = jax.random.uniform(k4, (7, 33), jnp.float32, minval=0.1, maxval=2.0)
    loss_r = jax.block_until_ready(mod_mse(pred_r, true_r, l1=0.5, l2=2.0))
    ref_r = mod_mse_ref(pred_r, true_r, l1=0.5, l2=2.0)
    assert jnp.allclose(loss_r, ref_r, rtol=1e-5, atol=1e-6), (loss_r, ref_r)

    # 3) 128-aligned element count with a partial last row-block (in-kernel mask)
    pred_m = jax.random.uniform(k5, (300, 160), jnp.float32, minval=0.1, maxval=2.0)
    true_m = jax.random.uniform(k6, (300, 160), jnp.float32, minval=0.1, maxval=2.0)
    loss_m = jax.block_until_ready(mod_mse(pred_m, true_m, l1=1.5, l2=0.25))
    ref_m = mod_mse_ref(pred_m, true_m, l1=1.5, l2=0.25)
    assert jnp.allclose(loss_m, ref_m, rtol=1e-5, atol=1e-6), (loss_m, ref_m)

    # 4) bf16 inputs (in-kernel cast, no f32 materialization in HBM)
    pred_b = jax.random.uniform(k7, (64, 128), jnp.float32, minval=0.1, maxval=2.0).astype(jnp.bfloat16)
    true_b = jax.random.uniform(k8, (64, 128), jnp.float32, minval=0.1, maxval=2.0).astype(jnp.bfloat16)
    loss_b = jax.block_until_ready(mod_mse(pred_b, true_b))
    ref_b = mod_mse_ref(pred_b, true_b)
    assert jnp.allclose(loss_b, ref_b, rtol=1e-5, atol=1e-6), (loss_b, ref_b)

    print("KERNEL_OK")
</pallas_src>

<mosaic_0001>
module attributes {stable_mosaic.version = 11 : i64} {
  func.func @kernel(%arg0: i32, %arg1: i32, %arg2: memref<16x128xf32, #tpu.memory_space<vmem>>, %arg3: memref<16x128xf32, #tpu.memory_space<vmem>>, %arg4: memref<2x8x128xf32, #tpu.memory_space<vmem>>) attributes {dimension_semantics = [#tpu.dimension_semantics<parallel>, #tpu.dimension_semantics<arbitrary>], iteration_bounds = array<i64: 1, 1>, scalar_prefetch = 0 : i64, scratch_operands = 0 : i64, tpu.core_type = #tpu.core_type<tc>, window_params = [{transform_indices = @transform_0, window_bounds = array<i64: 16, 128>}, {transform_indices = @transform_1, window_bounds = array<i64: 16, 128>}, {transform_indices = @transform_2, window_bounds = array<i64: 2, 8, 128>}]} {
    %c0_i32 = arith.constant 0 : i32
    %0 = arith.cmpi eq, %arg1, %c0_i32 : i32
    %1 = arith.extui %0 : i1 to i32
    %c0_i32_0 = arith.constant 0 : i32
    %2 = arith.cmpi ne, %1, %c0_i32_0 : i32
    scf.if %2 {
      %cst_17 = arith.constant 0.000000e+00 : f32
      %35 = vector.broadcast %cst_17 : f32 to vector<2x8x128xf32>
      %c0_18 = arith.constant 0 : index
      %c0_19 = arith.constant 0 : index
      %c0_20 = arith.constant 0 : index
      %36 = vector.load %arg4[%c0_18, %c0_19, %c0_20] : memref<2x8x128xf32, #tpu.memory_space<vmem>>, vector<2x8x128xf32>
      tpu.vector_store %arg4[%c0_18, %c0_19, %c0_20], %35 {strides = array<i32>} : memref<2x8x128xf32, #tpu.memory_space<vmem>>, vector<2x8x128xf32>,
    } else {
    }
    %cst = arith.constant 0.000000e+00 : f32
    %3 = vector.broadcast %cst : f32 to vector<8x128xf32>
    %c0_i32_1 = arith.constant 0 : i32
    %c16_i32 = arith.constant 16 : i32
    %4 = arith.muli %c0_i32_1, %c16_i32 : i32
    %5 = tpu.assume_multiple %4, 16 : i32
    %6 = arith.index_cast %5 : i32 to index
    %c0 = arith.constant 0 : index
    %7 = vector.load %arg2[%6, %c0] : memref<16x128xf32, #tpu.memory_space<vmem>>, vector<16x128xf32>
    %cst_2 = arith.constant 9.99999974E-6 : f32
    %8 = vector.broadcast %cst_2 : f32 to vector<16x128xf32>
    %9 = arith.addf %7, %8 : vector<16x128xf32>
    %10 = arith.index_cast %5 : i32 to index
    %c0_3 = arith.constant 0 : index
    %11 = vector.load %arg3[%10, %c0_3] : memref<16x128xf32, #tpu.memory_space<vmem>>, vector<16x128xf32>
    %12 = arith.subf %9, %11 : vector<16x128xf32>
    %13 = tpu.reciprocal %9 : vector<16x128xf32> -> vector<16x128xf32>
    %14 = arith.mulf %12, %13 : vector<16x128xf32>
    %15 = math.absf %14 : vector<16x128xf32>
    %16 = arith.mulf %12, %12 : vector<16x128xf32>
    %17 = vector.shape_cast %15 : vector<16x128xf32> to vector<2x8x128xf32>
    %cst_4 = arith.constant dense<0.000000e+00> : vector<8x128xf32>
    %18 = vector.multi_reduction <add>, %17, %cst_4 [0] : vector<2x8x128xf32> to vector<8x128xf32>
    %19 = arith.addf %3, %18 : vector<8x128xf32>
    %20 = vector.shape_cast %16 : vector<16x128xf32> to vector<2x8x128xf32>
    %cst_5 = arith.constant dense<0.000000e+00> : vector<8x128xf32>
    %21 = vector.multi_reduction <add>, %20, %cst_5 [0] : vector<2x8x128xf32> to vector<8x128xf32>
    %22 = arith.addf %3, %21 : vector<8x128xf32>
    %c1_i32 = arith.constant 1 : i32
    %c0_6 = arith.constant 0 : index
    %c0_7 = arith.constant 0 : index
    %c0_8 = arith.constant 0 : index
    %23 = vector.load %arg4[%c0_6, %c0_7, %c0_8] : memref<2x8x128xf32, #tpu.memory_space<vmem>>, vector<1x8x128xf32>
    %24 = vector.shape_cast %23 : vector<1x8x128xf32> to vector<8x128xf32>
    %25 = arith.addf %24, %19 : vector<8x128xf32>
    %c0_9 = arith.constant 0 : index
    %c0_10 = arith.constant 0 : index
    %c0_11 = arith.constant 0 : index
    %26 = vector.load %arg4[%c0_9, %c0_10, %c0_11] : memref<2x8x128xf32, #tpu.memory_space<vmem>>, vector<1x8x128xf32>
    %27 = vector.shape_cast %26 : vector<1x8x128xf32> to vector<8x128xf32>
    %28 = vector.shape_cast %25 : vector<8x128xf32> to vector<1x8x128xf32>
    tpu.vector_store %arg4[%c0_9, %c0_10, %c0_11], %28 {strides = array<i32>} : memref<2x8x128xf32, #tpu.memory_space<vmem>>, vector<1x8x128xf32>,
    %c1 = arith.constant 1 : index
    %c0_12 = arith.constant 0 : index
    %c0_13 = arith.constant 0 : index
    %29 = vector.load %arg4[%c1, %c0_12, %c0_13] : memref<2x8x128xf32, #tpu.memory_space<vmem>>, vector<1x8x128xf32>
    %30 = vector.shape_cast %29 : vector<1x8x128xf32> to vector<8x128xf32>
    %31 = arith.addf %30, %22 : vector<8x128xf32>
    %c1_14 = arith.constant 1 : index
    %c0_15 = arith.constant 0 : index
    %c0_16 = arith.constant 0 : index
    %32 = vector.load %arg4[%c1_14, %c0_15, %c0_16] : memref<2x8x128xf32, #tpu.memory_space<vmem>>, vector<1x8x128xf32>
    %33 = vector.shape_cast %32 : vector<1x8x128xf32> to vector<8x128xf32>
    %34 = vector.shape_cast %31 : vector<8x128xf32> to vector<1x8x128xf32>
    tpu.vector_store %arg4[%c1_14, %c0_15, %c0_16], %34 {strides = array<i32>} : memref<2x8x128xf32, #tpu.memory_space<vmem>>, vector<1x8x128xf32>,
    return
  }
  func.func @transform_0(%arg0: i32, %arg1: i32) -> (i32, i32) {
    %c1_i32 = arith.constant 1 : i32
    %0 = arith.muli %arg0, %c1_i32 : i32
    %1 = arith.addi %0, %arg1 : i32
    %c0_i32 = arith.constant 0 : i32
    %2 = arith.minsi %1, %c0_i32 : i32
    %c0_i32_0 = arith.constant 0 : i32
    %c0_i32_1 = arith.constant 0 : i32
    return %2, %c0_i32_0 : i32, i32
  }
  func.func @transform_1(%arg0: i32, %arg1: i32) -> (i32, i32) {
    %c1_i32 = arith.constant 1 : i32
    %0 = arith.muli %arg0, %c1_i32 : i32
    %1 = arith.addi %0, %arg1 : i32
    %c0_i32 = arith.constant 0 : i32
    %2 = arith.minsi %1, %c0_i32 : i32
    %c0_i32_0 = arith.constant 0 : i32
    %c0_i32_1 = arith.constant 0 : i32
    return %2, %c0_i32_0 : i32, i32
  }
  func.func @transform_2(%arg0: i32, %arg1: i32) -> (i32, i32, i32) {
    %c0_i32 = arith.constant 0 : i32
    %c0_i32_0 = arith.constant 0 : i32
    %c0_i32_1 = arith.constant 0 : i32
    return %arg0, %c0_i32, %c0_i32_0 : i32, i32, i32
  }
}

</mosaic_0001>

<bundles_post_ra>
// kernel: tpu_custom_call.1
= control target key start
LH: loop header
LB: loop body
LE: loop exit
PB: predicated region body
PF: predicated region fallthrough
CT: control target
= control target key end

     0   :  { %7 = vsyncpa [#allocation3], 0  ;;  %s262_s0 = inlined_call_operand.hbm [shape: f32[16,128], index: 0, kind: input, shape index: {}]   ;;  %s263_s1 = inlined_call_operand.hbm [shape: f32[16,128], index: 1, kind: input, shape index: {}]   ;;  %s264_s2 = inlined_call_operand.hbm [shape: f32[2,8,128], index: 2, kind: output, shape index: {}]  }
   0x1   :  { %8 = vsyncpa [#allocation6], 0 }
   0x2   :  { %9 = vsyncpa [#allocation4], 0  ;;  %s197_s9 = smov [#allocation2]   ;;  %s125_s13 = scalar_lea.hbm %s262_s0, 256 }
   0x3   :  { %s21_s10 = sshll.u32 %s197_s9, 4  ;;  %p126_p0 = scmp.ne.s32.totalorder %s262_s0, %s125_s13  ;;  %s22_s10 = int_to_ptr.vmem [resolvable:$true] %s21_s10 }
   0x4   :  { %p129_p1 = scmp.lt.u32.totalorder %s125_s13, %s262_s0 }
   0x6   :  { %p131_p2 = pnand %p129_p1, %p126_p0 }
   0x8   :  { %134 = shalt.err (!%p131_p2)
}
   0x9   :  { %s135_s18 = scalar_lea.vmem %s22_s10, 256  ;;  %p140_p4 = scmp.lt.s32.totalorder %s22_s10, %s22_s10 }
   0xa   :  { %p136_p3 = scmp.ne.s32.totalorder %s22_s10, %s135_s18  ;;  %p141_p5 = scmp.lt.s32.totalorder %s135_s18, %s135_s18 }
   0xc   :  { %p142_p6 = por %p141_p5, %p140_p4 }
   0xe   :  { %p143_p7 = pnand %p142_p6, %p136_p3 }
  0x10   :  { %146 = shalt.err (!%p143_p7)
}
  0x11   :  { %s198_s19 = smov 128   ;;  %s199_s20 = smov 8  }
  0x12   :  { %27 = dma.hbm_to_vmem [thread:$0]  %s262_s0, 256, %s22_s10, [#allocation3], %s198_s19, %s198_s19, %s199_s20  }
  0x13   :  { %s200_s23 = smov [#allocation5]   ;;  %s147_s27 = scalar_lea.hbm %s263_s1, 256 }
  0x14   :  { %s39_s24 = sshll.u32 %s200_s23, 4  ;;  %p148_p8 = scmp.ne.s32.totalorder %s263_s1, %s147_s27  ;;  %s40_s24 = int_to_ptr.vmem [resolvable:$true] %s39_s24 }
  0x15   :  { %p151_p9 = scmp.lt.u32.totalorder %s147_s27, %s263_s1 }
  0x17   :  { %p153_p10 = pnand %p151_p9, %p148_p8 }
  0x19   :  { %156 = shalt.err (!%p153_p10)
}
  0x1a   :  { %s157_s4 = scalar_lea.vmem %s40_s24, 256  ;;  %p162_p12 = scmp.lt.s32.totalorder %s40_s24, %s40_s24 }
  0x1b   :  { %p158_p11 = scmp.ne.s32.totalorder %s40_s24, %s157_s4  ;;  %p163_p13 = scmp.lt.s32.totalorder %s157_s4, %s157_s4 }
  0x1d   :  { %p164_p0 = por %p163_p13, %p162_p12 }
  0x1f   :  { %p165_p1 = pnand %p164_p0, %p158_p11 }
  0x21   :  { %168 = shalt.err (!%p165_p1)
}
  0x22   :  { %45 = dma.hbm_to_vmem [thread:$0]  %s263_s1, 256, %s40_s24, [#allocation6], %s198_s19, %s198_s19, %s199_s20  }
  0x23   :  { %191 = dma.done.wait [#allocation3], 256  }
  0x24   :  { %192 = vsyncadd [#allocation3], 4294967040 }
  0x25   :  { %193 = dma.done.wait [#allocation6], 256  }
  0x26   :  { %194 = vsyncadd [#allocation6], 4294967040  ;;  %v66_v0 = vld [vmem:[#allocation2] sm:$0xff]  ;;  %v67_v1 = vld [vmem:[#allocation2 + $0x8] sm:$0xff]  ;;  %s201_s1 = smov [#allocation7]  }
  0x27   :  { %v70_v2 = vld [vmem:[#allocation5] sm:$0xff]  ;;  %v68_v3 = vadd.f32 1e-05, %v66_v0  ;;  %v69_v4 = vadd.f32 1e-05, %v67_v1  ;;  %v71_v5 = vld [vmem:[#allocation5 + $0x8] sm:$0xff] }
  0x28   :  { %s98_s6 = sshll.u32 %s201_s1, 4  ;;  %s99_s6 = int_to_ptr.vmem [resolvable:$true] %s98_s6 }
  0x29   :  { %v72_v6 = vsub.f32 %v68_v3, %v70_v2  ;;  %v73_v7 = vsub.f32 %v69_v4, %v71_v5  ;;  %121 = vrcp.f32 %v68_v3  ;;  %s169_s7 = scalar_lea.vmem %s99_s6, 256  ;;  %p174_p3 = scmp.lt.s32.totalorder %s99_s6, %s99_s6 }
  0x2a   :  { %123 = vrcp.f32 %v69_v4  ;;  %p170_p2 = scmp.ne.s32.totalorder %s99_s6, %s169_s7  ;;  %p175_p4 = scmp.lt.s32.totalorder %s169_s7, %s169_s7 }
  0x2b   :  { %v80_v8 = vmul.f32 %v72_v6, %v72_v6  ;;  %v81_v9 = vmul.f32 %v73_v7, %v73_v7 }
  0x2c   :  { %p176_p5 = por %p175_p4, %p174_p3 }
  0x2d   :  { %v84_v10 = vadd.f32 %v81_v9, %v80_v8 }
  0x2e   :  { %p177_p6 = pnand %p176_p5, %p170_p2 }
  0x2f   :  { %92 = vst [vmem:[#allocation7 + $0x8] sm:$0xff] %v84_v10 }
  0x33   :  { %v122_v11 = vpop.eup %121 }
  0x34   :  { %v124_v12 = vpop.eup %123  ;;  %v76_v13 = vmul.f32 %v122_v11, %v72_v6 }
  0x35   :  { %v77_v14 = vmul.f32 %v124_v12, %v73_v7 }
  0x36   :  { %v78_v15 = vand.u32 2147483647, %v76_v13 }
  0x37   :  { %v79_v16 = vand.u32 2147483647, %v77_v14 }
  0x39   :  { %v82_v17 = vadd.f32 %v79_v16, %v78_v15 }
  0x3b   :  { %88 = vst [vmem:[#allocation7] sm:$0xff] %v82_v17 }
  0x3c   :  { %180 = shalt.err (!%p177_p6)
}
  0x3d   :  { %s181_s10 = scalar_lea.hbm %s264_s2, 256 }
  0x3e   :  { %p182_p7 = scmp.ne.s32.totalorder %s264_s2, %s181_s10  ;;  %p185_p8 = scmp.lt.u32.totalorder %s181_s10, %s264_s2 }
  0x40   :  { %p187_p9 = pnand %p185_p8, %p182_p7 }
  0x42   :  { %190 = shalt.err (!%p187_p9)
}
  0x43   :  { %104 = dma.vmem_to_hbm [thread:$0]  %s99_s6, 256, %s264_s2, [#allocation4], %s198_s19, %s198_s19, %s199_s20  }
  0x44   :  { %195 = dma.done.wait [#allocation4], 256  }
  0x45   :  { %196 = vsyncadd [#allocation4], 4294967040 }
  0x46   :  { %108 = vsyncpa [#allocation3], 1 }
  0x47   :  { %109 = vsyncpa [#allocation6], 1 }
  0x48   :  { %110 = vsyncpa [#allocation4], 1 }

</bundles_post_ra>
